<compile_context>
chip_gen: v7x
topology: tpu7x:2x2x1
jax: 0.10.0
libtpu: 0.0.40
codegen_flags: <defaults>
</compile_context>

<pallas_src>
import math

import jax
import jax.numpy as jnp
from jax.experimental import pallas as pl
from jax.experimental.pallas import tpu as pltpu

# Model hyper-parameters (small, consistent with the module's globals).
d_model = 32
d_k = 8
d_v = 8
n_heads = 4
LN_EPS = 1e-5                 # PyTorch nn.LayerNorm default
NEG_INF = -1000000000.0       # matches torch masked_fill_(-1e9)


# ----------------------------------------------------------------------------
# Single fused kernel: one grid step per batch element.
# ----------------------------------------------------------------------------
def _mha_fused_kernel(xq_ref, xk_ref, xv_ref, mask_ref, wqkv_ref, wfc_ref,
                      out_ref, attn_ref):
    xq = xq_ref[0]            # (Lq, d_model)  -- also the residual
    xk = xk_ref[0]            # (Lk, d_model)
    xv = xv_ref[0]            # (Lk, d_model)
    mask_add = mask_ref[0]    # (Lq, Lk) additive float mask (0 or -1e9)

    w = wqkv_ref[...]         # (3*n_heads*d_k, d_model), rows = [W_Q; W_K; W_V]
    wq = w[0 * n_heads * d_k:1 * n_heads * d_k]
    wk = w[1 * n_heads * d_k:2 * n_heads * d_k]
    wv = w[2 * n_heads * d_k:2 * n_heads * d_k + n_heads * d_v]

    # Contract on the "in_features" dim of the (out, in) Linear weights; the
    # MXU handles the transposed RHS natively (no host / XLU transposes).
    dn = (((1,), (1,)), ((), ()))
    # TODO(synk): a single fused QKV matmul is only valid for self-attention
    # (input_Q == input_K == input_V); three in-VMEM dots keep the module's
    # encoder-decoder generality and cost three tiny MXU passes.
    q = jax.lax.dot_general(xq, wq, dn, preferred_element_type=jnp.float32)
    k = jax.lax.dot_general(xk, wk, dn, preferred_element_type=jnp.float32)
    v = jax.lax.dot_general(xv, wv, dn, preferred_element_type=jnp.float32)

    inv_sqrt_dk = jnp.float32(1.0 / math.sqrt(d_k))

    attn_parts = []
    ctx_parts = []
    for h in range(n_heads):                       # static unroll, all ops 2-D
        qh = q[:, h * d_k:(h + 1) * d_k]           # (Lq, d_k)
        kh = k[:, h * d_k:(h + 1) * d_k]           # (Lk, d_k)
        vh = v[:, h * d_v:(h + 1) * d_v]           # (Lk, d_v)

        s = jax.lax.dot_general(qh, kh, dn,        # Q @ K^T  (Lq, Lk)
                                preferred_element_type=jnp.float32)
        s = s * inv_sqrt_dk + mask_add

        # softmax over last axis (numerically stabilized)
        m = jnp.max(s, axis=-1, keepdims=True)
        e = jnp.exp(s - m)
        a = e / jnp.sum(e, axis=-1, keepdims=True)

        attn_parts.append(a)
        ctx_parts.append(jnp.dot(a, vh, preferred_element_type=jnp.float32))

    # Lane-dense store of the attention probabilities: one (Lq, n_heads*Lk)
    # slab per batch (reshaped back to (B, H, Lq, Lk) outside the kernel).
    attn_ref[0] = jnp.concatenate(attn_parts, axis=-1)

    # Output projection + residual + LayerNorm (gamma=1, beta=0).
    context = jnp.concatenate(ctx_parts, axis=-1)            # (Lq, n_heads*d_v)
    out = jax.lax.dot_general(context, wfc_ref[...], dn,
                              preferred_element_type=jnp.float32)  # (Lq, d_model)
    x = out + xq
    mean = jnp.mean(x, axis=-1, keepdims=True)
    xc = x - mean
    var = jnp.mean(xc * xc, axis=-1, keepdims=True)
    out_ref[0] = xc * jax.lax.rsqrt(var + LN_EPS)


# ----------------------------------------------------------------------------
# Full MultiHeadAttention forward (one pallas_call)
# ----------------------------------------------------------------------------
@jax.jit
def multi_head_attention(input_Q, input_K, input_V, attn_mask,
                         W_Q, W_K, W_V, W_fc):
    """
    input_Q: (B, len_q, d_model), input_K/input_V: (B, len_k, d_model)
    attn_mask: (B, len_q, len_k) bool (True = masked)
    W_*: nn.Linear weights of shape (out_features, in_features)
    Returns: (output (B, len_q, d_model), attn (B, n_heads, len_q, len_k))
    """
    B, len_q, _ = input_Q.shape
    len_k = input_K.shape[1]

    # Additive mask (shared across heads), computed once.
    mask_add = attn_mask.astype(jnp.float32) * jnp.float32(NEG_INF)

    # One concatenated QKV weight -> one DMA instead of three.
    W_qkv = jnp.concatenate([W_Q, W_K, W_V], axis=0)  # (3*n_heads*d_k, d_model)
    qkv_rows = 2 * n_heads * d_k + n_heads * d_v

    out, attn_cat = pl.pallas_call(
        _mha_fused_kernel,
        out_shape=(
            jax.ShapeDtypeStruct((B, len_q, d_model), jnp.float32),
            jax.ShapeDtypeStruct((B, len_q, n_heads * len_k), jnp.float32),
        ),
        grid=(B,),
        in_specs=[
            pl.BlockSpec((1, len_q, d_model), lambda b: (b, 0, 0)),
            pl.BlockSpec((1, len_k, d_model), lambda b: (b, 0, 0)),
            pl.BlockSpec((1, len_k, d_model), lambda b: (b, 0, 0)),
            pl.BlockSpec((1, len_q, len_k), lambda b: (b, 0, 0)),
            pl.BlockSpec((qkv_rows, d_model), lambda b: (0, 0)),
            pl.BlockSpec((d_model, n_heads * d_v), lambda b: (0, 0)),
        ],
        out_specs=(
            pl.BlockSpec((1, len_q, d_model), lambda b: (b, 0, 0)),
            pl.BlockSpec((1, len_q, n_heads * len_k), lambda b: (b, 0, 0)),
        ),
        compiler_params=pltpu.CompilerParams(
            dimension_semantics=("parallel",)),
    )(input_Q, input_K, input_V, mask_add, W_qkv, W_fc)

    # (B, Lq, H*Lk) lane-dense slab -> (B, H, Lq, Lk), outside the kernel.
    attn = attn_cat.reshape(B, len_q, n_heads, len_k).transpose(0, 2, 1, 3)
    return out, attn


if __name__ == "__main__":
    B, S = 2, 8
    key = jax.random.PRNGKey(0)
    k1, k2, k3, k4, k5 = jax.random.split(key, 5)

    # Deterministic parameter init (shapes follow nn.Linear: (out, in)).
    W_Q = jax.random.normal(k1, (d_k * n_heads, d_model), jnp.float32) * 0.1
    W_K = jax.random.normal(k2, (d_k * n_heads, d_model), jnp.float32) * 0.1
    W_V = jax.random.normal(k3, (d_v * n_heads, d_model), jnp.float32) * 0.1
    W_fc = jax.random.normal(k4, (d_model, n_heads * d_v), jnp.float32) * 0.1

    # Self-attention inputs + causal (subsequent) mask, True = masked.
    x = jax.random.normal(k5, (B, S, d_model), jnp.float32)
    causal = jnp.triu(jnp.ones((S, S), dtype=jnp.bool_), k=1)
    attn_mask = jnp.broadcast_to(causal, (B, S, S))

    output, attn = multi_head_attention(x, x, x, attn_mask, W_Q, W_K, W_V, W_fc)
    jax.block_until_ready((output, attn))

    assert output.shape == (B, S, d_model)
    assert attn.shape == (B, n_heads, S, S)
    assert bool(jnp.all(jnp.isfinite(output)))
    # attention rows are valid probability distributions
    assert bool(jnp.allclose(jnp.sum(attn, axis=-1), 1.0, atol=1e-5))
    print("KERNEL_OK")
</pallas_src>

<mosaic_0001>
module attributes {stable_mosaic.version = 11 : i64} {
  func.func @_mha_fused_kernel(%arg0: i32, %arg1: memref<1x8x32xf32, #tpu.memory_space<vmem>>, %arg2: memref<1x8x32xf32, #tpu.memory_space<vmem>>, %arg3: memref<1x8x32xf32, #tpu.memory_space<vmem>>, %arg4: memref<1x8x8xf32, #tpu.memory_space<vmem>>, %arg5: memref<96x32xf32, #tpu.memory_space<vmem>>, %arg6: memref<32x32xf32, #tpu.memory_space<vmem>>, %arg7: memref<1x8x32xf32, #tpu.memory_space<vmem>>, %arg8: memref<1x8x32xf32, #tpu.memory_space<vmem>>) attributes {dimension_semantics = [#tpu.dimension_semantics<parallel>], iteration_bounds = array<i64: 2>, scalar_prefetch = 0 : i64, scratch_operands = 0 : i64, tpu.core_type = #tpu.core_type<tc>, window_params = [{transform_indices = @transform_0, window_bounds = array<i64: 1, 8, 32>}, {transform_indices = @transform_1, window_bounds = array<i64: 1, 8, 32>}, {transform_indices = @transform_2, window_bounds = array<i64: 1, 8, 32>}, {transform_indices = @transform_3, window_bounds = array<i64: 1, 8, 8>}, {pipeline_mode = #tpu.pipeline_mode<synchronous>, transform_indices = @transform_4, window_bounds = array<i64: 96, 32>}, {pipeline_mode = #tpu.pipeline_mode<synchronous>, transform_indices = @transform_5, window_bounds = array<i64: 32, 32>}, {transform_indices = @transform_6, window_bounds = array<i64: 1, 8, 32>}, {transform_indices = @transform_7, window_bounds = array<i64: 1, 8, 32>}]} {
    %c0 = arith.constant 0 : index
    %c0_0 = arith.constant 0 : index
    %c0_1 = arith.constant 0 : index
    %0 = vector.load %arg1[%c0, %c0_0, %c0_1] : memref<1x8x32xf32, #tpu.memory_space<vmem>>, vector<1x8x32xf32>
    %1 = vector.shape_cast %0 : vector<1x8x32xf32> to vector<8x32xf32>
    %c0_2 = arith.constant 0 : index
    %c0_3 = arith.constant 0 : index
    %c0_4 = arith.constant 0 : index
    %2 = vector.load %arg2[%c0_2, %c0_3, %c0_4] : memref<1x8x32xf32, #tpu.memory_space<vmem>>, vector<1x8x32xf32>
    %3 = vector.shape_cast %2 : vector<1x8x32xf32> to vector<8x32xf32>
    %c0_5 = arith.constant 0 : index
    %c0_6 = arith.constant 0 : index
    %c0_7 = arith.constant 0 : index
    %4 = vector.load %arg3[%c0_5, %c0_6, %c0_7] : memref<1x8x32xf32, #tpu.memory_space<vmem>>, vector<1x8x32xf32>
    %5 = vector.shape_cast %4 : vector<1x8x32xf32> to vector<8x32xf32>
    %c0_8 = arith.constant 0 : index
    %c0_9 = arith.constant 0 : index
    %c0_10 = arith.constant 0 : index
    %6 = vector.load %arg4[%c0_8, %c0_9, %c0_10] : memref<1x8x8xf32, #tpu.memory_space<vmem>>, vector<1x8x8xf32>
    %7 = vector.shape_cast %6 : vector<1x8x8xf32> to vector<8x8xf32>
    %c0_11 = arith.constant 0 : index
    %c0_12 = arith.constant 0 : index
    %8 = vector.load %arg5[%c0_11, %c0_12] : memref<96x32xf32, #tpu.memory_space<vmem>>, vector<96x32xf32>
    %9 = vector.extract_strided_slice %8 {offsets = [0, 0], sizes = [32, 32], strides = [1, 1]} : vector<96x32xf32> to vector<32x32xf32>
    %10 = vector.extract_strided_slice %8 {offsets = [32, 0], sizes = [32, 32], strides = [1, 1]} : vector<96x32xf32> to vector<32x32xf32>
    %11 = vector.extract_strided_slice %8 {offsets = [64, 0], sizes = [32, 32], strides = [1, 1]} : vector<96x32xf32> to vector<32x32xf32>
    %cst = arith.constant dense<0.000000e+00> : vector<8x32xf32>
    %12 = tpu.matmul %1, %9, %cst {dimension_numbers = #tpu.dot_dimension_numbers<[1], [1], [0], [0], [0, 0, 1, 0], [], []>} : vector<8x32xf32>, vector<32x32xf32>, vector<8x32xf32> -> vector<8x32xf32>
    %cst_13 = arith.constant dense<0.000000e+00> : vector<8x32xf32>
    %13 = tpu.matmul %3, %10, %cst_13 {dimension_numbers = #tpu.dot_dimension_numbers<[1], [1], [0], [0], [0, 0, 1, 0], [], []>} : vector<8x32xf32>, vector<32x32xf32>, vector<8x32xf32> -> vector<8x32xf32>
    %cst_14 = arith.constant dense<0.000000e+00> : vector<8x32xf32>
    %14 = tpu.matmul %5, %11, %cst_14 {dimension_numbers = #tpu.dot_dimension_numbers<[1], [1], [0], [0], [0, 0, 1, 0], [], []>} : vector<8x32xf32>, vector<32x32xf32>, vector<8x32xf32> -> vector<8x32xf32>
    %15 = vector.extract_strided_slice %12 {offsets = [0, 0], sizes = [8, 8], strides = [1, 1]} : vector<8x32xf32> to vector<8x8xf32>
    %16 = vector.extract_strided_slice %13 {offsets = [0, 0], sizes = [8, 8], strides = [1, 1]} : vector<8x32xf32> to vector<8x8xf32>
    %17 = vector.extract_strided_slice %14 {offsets = [0, 0], sizes = [8, 8], strides = [1, 1]} : vector<8x32xf32> to vector<8x8xf32>
    %cst_15 = arith.constant dense<0.000000e+00> : vector<8x8xf32>
    %18 = tpu.matmul %15, %16, %cst_15 {dimension_numbers = #tpu.dot_dimension_numbers<[1], [1], [0], [0], [0, 0, 1, 0], [], []>} : vector<8x8xf32>, vector<8x8xf32>, vector<8x8xf32> -> vector<8x8xf32>
    %cst_16 = arith.constant 0.353553385 : f32
    %19 = vector.broadcast %cst_16 : f32 to vector<8x8xf32>
    %20 = arith.mulf %18, %19 : vector<8x8xf32>
    %21 = arith.addf %20, %7 : vector<8x8xf32>
    %cst_17 = arith.constant dense<0xFF800000> : vector<8xf32>
    %22 = vector.multi_reduction <maximumf>, %21, %cst_17 [1] : vector<8x8xf32> to vector<8xf32>
    %23 = vector.shape_cast %22 : vector<8xf32> to vector<8x1xf32>
    %24 = vector.broadcast %23 : vector<8x1xf32> to vector<8x8xf32>
    %25 = arith.subf %21, %24 : vector<8x8xf32>
    %26 = math.exp %25 : vector<8x8xf32>
    %cst_18 = arith.constant dense<0.000000e+00> : vector<8xf32>
    %27 = vector.multi_reduction <add>, %26, %cst_18 [1] : vector<8x8xf32> to vector<8xf32>
    %28 = vector.shape_cast %27 : vector<8xf32> to vector<8x1xf32>
    %29 = vector.broadcast %28 : vector<8x1xf32> to vector<8x8xf32>
    %30 = arith.divf %26, %29 : vector<8x8xf32>
    %cst_19 = arith.constant dense<0.000000e+00> : vector<8x8xf32>
    %31 = tpu.matmul %30, %17, %cst_19 {dimension_numbers = #tpu.dot_dimension_numbers<[1], [0], [0], [1], [0, 0, 1, 1], [], []>} : vector<8x8xf32>, vector<8x8xf32>, vector<8x8xf32> -> vector<8x8xf32>
    %32 = vector.extract_strided_slice %12 {offsets = [0, 8], sizes = [8, 8], strides = [1, 1]} : vector<8x32xf32> to vector<8x8xf32>
    %33 = vector.extract_strided_slice %13 {offsets = [0, 8], sizes = [8, 8], strides = [1, 1]} : vector<8x32xf32> to vector<8x8xf32>
    %34 = vector.extract_strided_slice %14 {offsets = [0, 8], sizes = [8, 8], strides = [1, 1]} : vector<8x32xf32> to vector<8x8xf32>
    %cst_20 = arith.constant dense<0.000000e+00> : vector<8x8xf32>
    %35 = tpu.matmul %32, %33, %cst_20 {dimension_numbers = #tpu.dot_dimension_numbers<[1], [1], [0], [0], [0, 0, 1, 0], [], []>} : vector<8x8xf32>, vector<8x8xf32>, vector<8x8xf32> -> vector<8x8xf32>
    %cst_21 = arith.constant 0.353553385 : f32
    %36 = vector.broadcast %cst_21 : f32 to vector<8x8xf32>
    %37 = arith.mulf %35, %36 : vector<8x8xf32>
    %38 = arith.addf %37, %7 : vector<8x8xf32>
    %cst_22 = arith.constant dense<0xFF800000> : vector<8xf32>
    %39 = vector.multi_reduction <maximumf>, %38, %cst_22 [1] : vector<8x8xf32> to vector<8xf32>
    %40 = vector.shape_cast %39 : vector<8xf32> to vector<8x1xf32>
    %41 = vector.broadcast %40 : vector<8x1xf32> to vector<8x8xf32>
    %42 = arith.subf %38, %41 : vector<8x8xf32>
    %43 = math.exp %42 : vector<8x8xf32>
    %cst_23 = arith.constant dense<0.000000e+00> : vector<8xf32>
    %44 = vector.multi_reduction <add>, %43, %cst_23 [1] : vector<8x8xf32> to vector<8xf32>
    %45 = vector.shape_cast %44 : vector<8xf32> to vector<8x1xf32>
    %46 = vector.broadcast %45 : vector<8x1xf32> to vector<8x8xf32>
    %47 = arith.divf %43, %46 : vector<8x8xf32>
    %cst_24 = arith.constant dense<0.000000e+00> : vector<8x8xf32>
    %48 = tpu.matmul %47, %34, %cst_24 {dimension_numbers = #tpu.dot_dimension_numbers<[1], [0], [0], [1], [0, 0, 1, 1], [], []>} : vector<8x8xf32>, vector<8x8xf32>, vector<8x8xf32> -> vector<8x8xf32>
    %49 = vector.extract_strided_slice %12 {offsets = [0, 16], sizes = [8, 8], strides = [1, 1]} : vector<8x32xf32> to vector<8x8xf32>
    %50 = vector.extract_strided_slice %13 {offsets = [0, 16], sizes = [8, 8], strides = [1, 1]} : vector<8x32xf32> to vector<8x8xf32>
    %51 = vector.extract_strided_slice %14 {offsets = [0, 16], sizes = [8, 8], strides = [1, 1]} : vector<8x32xf32> to vector<8x8xf32>
    %cst_25 = arith.constant dense<0.000000e+00> : vector<8x8xf32>
    %52 = tpu.matmul %49, %50, %cst_25 {dimension_numbers = #tpu.dot_dimension_numbers<[1], [1], [0], [0], [0, 0, 1, 0], [], []>} : vector<8x8xf32>, vector<8x8xf32>, vector<8x8xf32> -> vector<8x8xf32>
    %cst_26 = arith.constant 0.353553385 : f32
    %53 = vector.broadcast %cst_26 : f32 to vector<8x8xf32>
    %54 = arith.mulf %52, %53 : vector<8x8xf32>
    %55 = arith.addf %54, %7 : vector<8x8xf32>
    %cst_27 = arith.constant dense<0xFF800000> : vector<8xf32>
    %56 = vector.multi_reduction <maximumf>, %55, %cst_27 [1] : vector<8x8xf32> to vector<8xf32>
    %57 = vector.shape_cast %56 : vector<8xf32> to vector<8x1xf32>
    %58 = vector.broadcast %57 : vector<8x1xf32> to vector<8x8xf32>
    %59 = arith.subf %55, %58 : vector<8x8xf32>
    %60 = math.exp %59 : vector<8x8xf32>
    %cst_28 = arith.constant dense<0.000000e+00> : vector<8xf32>
    %61 = vector.multi_reduction <add>, %60, %cst_28 [1] : vector<8x8xf32> to vector<8xf32>
    %62 = vector.shape_cast %61 : vector<8xf32> to vector<8x1xf32>
    %63 = vector.broadcast %62 : vector<8x1xf32> to vector<8x8xf32>
    %64 = arith.divf %60, %63 : vector<8x8xf32>
    %cst_29 = arith.constant dense<0.000000e+00> : vector<8x8xf32>
    %65 = tpu.matmul %64, %51, %cst_29 {dimension_numbers = #tpu.dot_dimension_numbers<[1], [0], [0], [1], [0, 0, 1, 1], [], []>} : vector<8x8xf32>, vector<8x8xf32>, vector<8x8xf32> -> vector<8x8xf32>
    %66 = vector.extract_strided_slice %12 {offsets = [0, 24], sizes = [8, 8], strides = [1, 1]} : vector<8x32xf32> to vector<8x8xf32>
    %67 = vector.extract_strided_slice %13 {offsets = [0, 24], sizes = [8, 8], strides = [1, 1]} : vector<8x32xf32> to vector<8x8xf32>
    %68 = vector.extract_strided_slice %14 {offsets = [0, 24], sizes = [8, 8], strides = [1, 1]} : vector<8x32xf32> to vector<8x8xf32>
    %cst_30 = arith.constant dense<0.000000e+00> : vector<8x8xf32>
    %69 = tpu.matmul %66, %67, %cst_30 {dimension_numbers = #tpu.dot_dimension_numbers<[1], [1], [0], [0], [0, 0, 1, 0], [], []>} : vector<8x8xf32>, vector<8x8xf32>, vector<8x8xf32> -> vector<8x8xf32>
    %cst_31 = arith.constant 0.353553385 : f32
    %70 = vector.broadcast %cst_31 : f32 to vector<8x8xf32>
    %71 = arith.mulf %69, %70 : vector<8x8xf32>
    %72 = arith.addf %71, %7 : vector<8x8xf32>
    %cst_32 = arith.constant dense<0xFF800000> : vector<8xf32>
    %73 = vector.multi_reduction <maximumf>, %72, %cst_32 [1] : vector<8x8xf32> to vector<8xf32>
    %74 = vector.shape_cast %73 : vector<8xf32> to vector<8x1xf32>
    %75 = vector.broadcast %74 : vector<8x1xf32> to vector<8x8xf32>
    %76 = arith.subf %72, %75 : vector<8x8xf32>
    %77 = math.exp %76 : vector<8x8xf32>
    %cst_33 = arith.constant dense<0.000000e+00> : vector<8xf32>
    %78 = vector.multi_reduction <add>, %77, %cst_33 [1] : vector<8x8xf32> to vector<8xf32>
    %79 = vector.shape_cast %78 : vector<8xf32> to vector<8x1xf32>
    %80 = vector.broadcast %79 : vector<8x1xf32> to vector<8x8xf32>
    %81 = arith.divf %77, %80 : vector<8x8xf32>
    %cst_34 = arith.constant dense<0.000000e+00> : vector<8x8xf32>
    %82 = tpu.matmul %81, %68, %cst_34 {dimension_numbers = #tpu.dot_dimension_numbers<[1], [0], [0], [1], [0, 0, 1, 1], [], []>} : vector<8x8xf32>, vector<8x8xf32>, vector<8x8xf32> -> vector<8x8xf32>
    %83 = tpu.concatenate %30, %47, %64, %81 in 1 : vector<8x8xf32>, vector<8x8xf32>, vector<8x8xf32>, vector<8x8xf32> -> vector<8x32xf32>
    %c0_35 = arith.constant 0 : index
    %c0_36 = arith.constant 0 : index
    %c0_37 = arith.constant 0 : index
    %84 = vector.load %arg8[%c0_35, %c0_36, %c0_37] : memref<1x8x32xf32, #tpu.memory_space<vmem>>, vector<1x8x32xf32>
    %85 = vector.shape_cast %84 : vector<1x8x32xf32> to vector<8x32xf32>
    %86 = vector.shape_cast %83 : vector<8x32xf32> to vector<1x8x32xf32>
    tpu.vector_store %arg8[%c0_35, %c0_36, %c0_37], %86 {strides = array<i32>} : memref<1x8x32xf32, #tpu.memory_space<vmem>>, vector<1x8x32xf32>,
    %87 = tpu.concatenate %31, %48, %65, %82 in 1 : vector<8x8xf32>, vector<8x8xf32>, vector<8x8xf32>, vector<8x8xf32> -> vector<8x32xf32>
    %c0_38 = arith.constant 0 : index
    %c0_39 = arith.constant 0 : index
    %88 = vector.load %arg6[%c0_38, %c0_39] : memref<32x32xf32, #tpu.memory_space<vmem>>, vector<32x32xf32>
    %cst_40 = arith.constant dense<0.000000e+00> : vector<8x32xf32>
    %89 = tpu.matmul %87, %88, %cst_40 {dimension_numbers = #tpu.dot_dimension_numbers<[1], [1], [0], [0], [0, 0, 1, 0], [], []>} : vector<8x32xf32>, vector<32x32xf32>, vector<8x32xf32> -> vector<8x32xf32>
    %90 = arith.addf %89, %1 : vector<8x32xf32>
    %cst_41 = arith.constant dense<0.000000e+00> : vector<8xf32>
    %91 = vector.multi_reduction <add>, %90, %cst_41 [1] : vector<8x32xf32> to vector<8xf32>
    %92 = vector.shape_cast %91 : vector<8xf32> to vector<8x1xf32>
    %cst_42 = arith.constant 3.200000e+01 : f32
    %93 = vector.broadcast %cst_42 : f32 to vector<8x1xf32>
    %94 = arith.divf %92, %93 : vector<8x1xf32>
    %95 = vector.broadcast %94 : vector<8x1xf32> to vector<8x32xf32>
    %96 = arith.subf %90, %95 : vector<8x32xf32>
    %97 = arith.mulf %96, %96 : vector<8x32xf32>
    %cst_43 = arith.constant dense<0.000000e+00> : vector<8xf32>
    %98 = vector.multi_reduction <add>, %97, %cst_43 [1] : vector<8x32xf32> to vector<8xf32>
    %99 = vector.shape_cast %98 : vector<8xf32> to vector<8x1xf32>
    %cst_44 = arith.constant 3.200000e+01 : f32
    %100 = vector.broadcast %cst_44 : f32 to vector<8x1xf32>
    %101 = arith.divf %99, %100 : vector<8x1xf32>
    %cst_45 = arith.constant 9.99999974E-6 : f32
    %102 = vector.broadcast %cst_45 : f32 to vector<8x1xf32>
    %103 = arith.addf %101, %102 : vector<8x1xf32>
    %104 = math.rsqrt %103 : vector<8x1xf32>
    %105 = vector.broadcast %104 : vector<8x1xf32> to vector<8x32xf32>
    %106 = arith.mulf %96, %105 : vector<8x32xf32>
    %c0_46 = arith.constant 0 : index
    %c0_47 = arith.constant 0 : index
    %c0_48 = arith.constant 0 : index
    %107 = vector.load %arg7[%c0_46, %c0_47, %c0_48] : memref<1x8x32xf32, #tpu.memory_space<vmem>>, vector<1x8x32xf32>
    %108 = vector.shape_cast %107 : vector<1x8x32xf32> to vector<8x32xf32>
    %109 = vector.shape_cast %106 : vector<8x32xf32> to vector<1x8x32xf32>
    tpu.vector_store %arg7[%c0_46, %c0_47, %c0_48], %109 {strides = array<i32>} : memref<1x8x32xf32, #tpu.memory_space<vmem>>, vector<1x8x32xf32>,
    return
  }
  func.func @transform_0(%arg0: i32) -> (i32, i32, i32) {
    %c0_i32 = arith.constant 0 : i32
    %c0_i32_0 = arith.constant 0 : i32
    %c0_i32_1 = arith.constant 0 : i32
    return %arg0, %c0_i32, %c0_i32_0 : i32, i32, i32
  }
  func.func @transform_1(%arg0: i32) -> (i32, i32, i32) {
    %c0_i32 = arith.constant 0 : i32
    %c0_i32_0 = arith.constant 0 : i32
    %c0_i32_1 = arith.constant 0 : i32
    return %arg0, %c0_i32, %c0_i32_0 : i32, i32, i32
  }
  func.func @transform_2(%arg0: i32) -> (i32, i32, i32) {
    %c0_i32 = arith.constant 0 : i32
    %c0_i32_0 = arith.constant 0 : i32
    %c0_i32_1 = arith.constant 0 : i32
    return %arg0, %c0_i32, %c0_i32_0 : i32, i32, i32
  }
  func.func @transform_3(%arg0: i32) -> (i32, i32, i32) {
    %c0_i32 = arith.constant 0 : i32
    %c0_i32_0 = arith.constant 0 : i32
    %c0_i32_1 = arith.constant 0 : i32
    return %arg0, %c0_i32, %c0_i32_0 : i32, i32, i32
  }
  func.func @transform_4(%arg0: i32) -> (i32, i32) {
    %c0_i32 = arith.constant 0 : i32
    %c0_i32_0 = arith.constant 0 : i32
    %c0_i32_1 = arith.constant 0 : i32
    return %c0_i32, %c0_i32_0 : i32, i32
  }
  func.func @transform_5(%arg0: i32) -> (i32, i32) {
    %c0_i32 = arith.constant 0 : i32
    %c0_i32_0 = arith.constant 0 : i32
    %c0_i32_1 = arith.constant 0 : i32
    return %c0_i32, %c0_i32_0 : i32, i32
  }
  func.func @transform_6(%arg0: i32) -> (i32, i32, i32) {
    %c0_i32 = arith.constant 0 : i32
    %c0_i32_0 = arith.constant 0 : i32
    %c0_i32_1 = arith.constant 0 : i32
    return %arg0, %c0_i32, %c0_i32_0 : i32, i32, i32
  }
  func.func @transform_7(%arg0: i32) -> (i32, i32, i32) {
    %c0_i32 = arith.constant 0 : i32
    %c0_i32_0 = arith.constant 0 : i32
    %c0_i32_1 = arith.constant 0 : i32
    return %arg0, %c0_i32, %c0_i32_0 : i32, i32, i32
  }
}

</mosaic_0001>

<bundles_post_ra>
// kernel: multi_head_attention.1
= control target key start
LH: loop header
LB: loop body
LE: loop exit
PB: predicated region body
PF: predicated region fallthrough
CT: control target
= control target key end

     0   :  { %13 = vsyncpa [#allocation3], 0  ;;  %s2239_s0 = inlined_call_operand.vmem [shape: f32[2,8,32], index: 0, kind: input, shape index: {}]   ;;  %s2240_s1 = inlined_call_operand.vmem [shape: f32[2,8,32], index: 1, kind: input, shape index: {}]   ;;  %s2241_s2 = inlined_call_operand.vmem [shape: f32[2,8,32], index: 2, kind: input, shape index: {}]   ;;  %s2242_s3 = inlined_call_operand.vmem [shape: f32[2,8,8], index: 3, kind: input, shape index: {}]   ;;  %s2243_s4 = inlined_call_operand.vmem [shape: f32[96,32], index: 4, kind: input, shape index: {}]   ;;  %s2244_s5 = inlined_call_operand.vmem [shape: f32[32,32], index: 5, kind: input, shape index: {}]   ;;  %s2245_s6 = inlined_call_operand.hbm [shape: f32[2,8,32], index: 6, kind: output, shape index: {0}]   ;;  %s2246_s7 = inlined_call_operand.vmem [shape: f32[2,8,32], index: 7, kind: output, shape index: {1}]  }
   0x1   :  { %15 = vsyncpa [#allocation3 + $0x1], 0  ;;  %s1925_s24 = smov 0   ;;  %s1927_s25 = smov 0  }
   0x2   :  { %s1929_s26 = smov 0   ;;  %s1931_s27 = smov 0  }
   0x3 LB: > { %s1946_s28 = sadd.s32 4294967295, %s1873_s27   ;;  %s1547_s29 = sadd.s32 4294967294, %s1873_s27   ;;  %s1873_s27 = sphi %s1931_s27, %s2254_s27   ;;  %s1869_s26 = sphi %s1929_s26, %s2253_s26   ;;  %s1865_s25 = sphi %s1927_s25, %s2252_s25   ;;  %s1861_s24 = sphi %s1925_s24, %s2251_s24  }
   0x4   : > { %s1950_s30 = sadd.s32 1, %s1873_s27   ;;  %s174_s8 = sadd.s32 1, %s1869_s26 }
   0x5   : > { %s171_s9 = ssub.s32 %s1873_s27, %s1950_s30  ;;  %p184_p0 = scmp.ne.s32.totalorder %s1869_s26, %s1865_s25 }
   0x6   : > { %p172_p1 = scmp.eq.s32.totalorder %s171_s9, 0  ;;  %p185_p2 = scmp.eq.s32.totalorder %s1946_s28, 1 }
   0x7   : > { %p190_p3 = scmp.ne.s32.totalorder %s1865_s25, %s1861_s24  ;;  %p191_p4 = scmp.eq.s32.totalorder %s1547_s29, 1 }
   0x8   : > { %s1961_s10 = scalar_select %p172_p1, %s1869_s26, %s174_s8  }
   0x9   : > { %p1963_p5 = por %p185_p2, %p184_p0  ;;  %p1967_p6 = por %p191_p4, %p190_p3 }
   0xa   : > { %p1550_p7 = scmp.ge.s32.totalorder %s1873_s27, 1  ;;  %p269_p8 = scmp.lt.s32.totalorder %s1873_s27, 3 }
   0xc   : > { %p270_p9 = pnand %p1550_p7, %p269_p8 }
   0xd   : > { %v344_v0 = vld [vmem:[%s2243_s4 + $0x20] sm:$0xff] (!%p270_p9)  ;;  %v345_v1 = vld [vmem:[%s2243_s4 + $0x28] sm:$0xff] (!%p270_p9)  ;;  %vm352_vm0 = vcmask (!%p270_p9), 261120   ;;  %v1875_v3 = vmov (!%p270_p9), 0.0|0.0   ;;  %p316_p10 = scmp.lt.s32.totalorder (!%p270_p9), %s1946_s28, 1  ;;  %vm1876_vm2 = vmmov (!%p270_p9), 0  }
   0xe   : > { %273 = sbr.rel (%p270_p9) target bundleno = 3243 (0xcab), region = 44  ;;  %v340_v2 = vld [vmem:[%s2243_s4] sm:$0xff] (!%p270_p9)  ;;  %1721 = vmatprep.subr.bf16.mxu1 (!%p270_p9), %v1875_v3  ;;  %vm1985_vm1 = vmpackc.low (!%p270_p9), %vm352_vm0, %vm352_vm0  ;;  %v1722_v5 = vpack.c.bf16 (!%p270_p9), %v345_v1, %v344_v0  ;;  %1713 = vmatprep.subr.bf16.mxu0 (!%p270_p9), %v1875_v3  ;;  %v341_v6 = vld [vmem:[%s2243_s4 + $0x8] sm:$0xff] (!%p270_p9)  ;;  %v1877_v8 = vmov (!%p270_p9), 0.0   ;;  %vm608_vm3 = vcmask (!%p270_p9), 64512   ;;  %s1878_s23 = smov (!%p270_p9), 120  }
   0xf   : > { %v1714_v7 = vpack.c.bf16 (!%p270_p9), %v341_v6, %v340_v2  ;;  %1648 = vmatprep.mubr.msk.f32.mxu1 (!%p270_p9), %vm1876_vm2, %v1877_v8  ;;  %1637 = vmatprep.mubr.msk.f32.mxu0 (!%p270_p9), %vm1876_vm2, %v1877_v8  ;;  %v346_v9 = vld [vmem:[%s2243_s4 + $0x30] sm:$0xff] (!%p270_p9)  ;;  %v347_v10 = vld [vmem:[%s2243_s4 + $0x38] sm:$0xff] (!%p270_p9)  ;;  %v348_v21 = vld [vmem:[%s2243_s4 + $0x40] sm:$0xff] (!%p270_p9)  ;;  %s1879_s9 = smov (!%p270_p9), 112   ;;  %s1881_s13 = smov (!%p270_p9), 8   ;;  %vm1283_vm4 = vcmask (!%p270_p9), 130048  }
  0x10   : > { %1724 = vmatpush3.bf16.xpose.msk.msra.mxu1 (!%p270_p9), %vm1985_vm1, %v1722_v5  ;;  %v342_v11 = vld [vmem:[%s2243_s4 + $0x10] sm:$0xff] (!%p270_p9)  ;;  %v343_v12 = vld [vmem:[%s2243_s4 + $0x18] sm:$0xff] (!%p270_p9)  ;;  %v1726_v13 = vpack.c.bf16 (!%p270_p9), %v347_v10, %v346_v9  ;;  %v349_v22 = vld [vmem:[%s2243_s4 + $0x48] sm:$0xff] (!%p270_p9)  ;;  %s1882_s14 = smov (!%p270_p9), 16   ;;  %vm1285_vm5 = vcmask (!%p270_p9), 195584   ;;  %s1590_s17 = sshll.u32 (!%p270_p9), %s1946_s28, 7 }
  0x11   : > { %1716 = vmatpush3.bf16.xpose.msk.msra.mxu0 (!%p270_p9), %vm1985_vm1, %v1714_v7  ;;  %1725 = vmatprep.subr.bf16.mxu1 (!%p270_p9), %v1875_v3  ;;  %v1718_v14 = vpack.c.bf16 (!%p270_p9), %v343_v12, %v342_v11  ;;  %v1730_v23 = vpack.c.bf16 (!%p270_p9), %v349_v22, %v348_v21  ;;  %v350_v24 = vld [vmem:[%s2243_s4 + $0x50] sm:$0xff] (!%p270_p9)  ;;  %v351_v25 = vld [vmem:[%s2243_s4 + $0x58] sm:$0xff] (!%p270_p9) }
  0x12   : > { %1717 = vmatprep.subr.bf16.mxu0 (!%p270_p9), %v1875_v3  ;;  %v1734_v26 = vpack.c.bf16 (!%p270_p9), %v351_v25, %v350_v24 }
  0x15   : > { %s317_s15 = scalar_select %p316_p10, %s1946_s28, 1 }
  0x16   : > { %s1884_s28 = smov [#allocation2]  }
  0x17   : > { %s2019_s16 = sshll.u32 %s317_s15, 3 }
  0x18   : > { %1728 = vmatpush3.bf16.xpose.msk.msra.mxu1 %vm1985_vm1, %v1726_v13  ;;  %s323_s19 = scalar_lea.vmem %s2240_s1, %s2019_s16  ;;  %s319_s22 = scalar_lea.vmem %s2239_s0, %s2019_s16 }
  0x19   : > { %1720 = vmatpush3.bf16.xpose.msk.msra.mxu0 %vm1985_vm1, %v1718_v14  ;;  %1662 = vmatprep.subr.mxu1 %v1877_v8  ;;  %v337_v15 = vld [vmem:[%s323_s19] sm:$0xff]  ;;  %s327_s21 = scalar_lea.vmem %s2241_s2, %s2019_s16  ;;  %s331_s8 = scalar_lea.vmem %s2242_s3, %s2019_s16 }
  0x1a   : > { %1729 = vmatprep.subr.bf16.mxu0 %v1875_v3  ;;  %v2035_v16 = vld [vmem:[%s319_s22] sm:$0xff] }
  0x1b   : > { %v338_v27 = vld [vmem:[%s327_s21] sm:$0xff]  ;;  %s2196_s21 = scalar_lea.hbm %s2245_s6, %s1590_s17 }
  0x1c   : > { %v2088_v29 = vld [vmem:[%s331_s8] sm:$0xff]  ;;  %s1883_s8 = smov 24  }
  0x1f   : > { %1649 = vmatmul.mubr.msk.f32.vlgmr.msra.gmra.mrb[0].mxu1 %vm352_vm0, %v337_v15 }
  0x20   : > { %1638 = vmatmul.mubr.msk.f32.vlgmr.msra.gmra.mrb[0].mxu0 %vm352_vm0, %v2035_v16  ;;  %1664 = vmatprep.mubr.msk.f32.mxu1 %vm1876_vm2, %v1877_v8 }
  0x21   : > { %1659 = vmatprep.mubr.msk.f32.mxu0 %vm1876_vm2, %v1877_v8  ;;  %1732 = vmatpush3.bf16.xpose.msk.msra.mxu0 %vm1985_vm1, %v1730_v23 }
  0x22   : > { %1733 = vmatprep.subr.bf16.mxu0 %v1875_v3 }
  0x29   : > { %1736 = vmatpush3.bf16.xpose.msk.msra.mxu0 %vm1985_vm1, %v1734_v26 }
  0x2a   : > { %1737 = vmatprep.subr.bf16.mxu0 %v1875_v3 }
  0x30   : > { %1660 = vmatmul.mubr.msk.f32.vlgmr.msra.gmra.mrb[2].mxu0 %vm352_vm0, %v338_v27 }
  0x31   : > { %1710 = vmatprep.mubr.msk.f32.mxu0 %vm1876_vm2, %v1877_v8 }
  0xf2   : > { %v2044_v17 = vpop.f32.mrb[0].mxu1 }
  0xf3   : > { %773 = vrot.lane.b32.xlu1 %v2044_v17, %s1878_s23  ;;  %v1650_v18 = vpop.f32.mrb[1].mxu1  ;;  %1663 = vmatpush3.xpose.msk.msra.mxu1 %vm608_vm3, %v2044_v17  ;;  %v2050_v19 = vpop.f32.mrb[0].mxu0 }
  0xf4   : > { %v1639_v20 = vpop.f32.mrb[1].mxu0  ;;  %1667 = vmatprep.subr.mxu1 %v1877_v8 }
  0xf6   : > { %1665 = vmatmul.mubr.msk.f32.vlgmr.msra.gmra.mrb[2].mxu1 %vm608_vm3, %v2050_v19 }
  0xf7   : > { %771 = vrot.lane.b32.xlu1 %v2050_v19, %s1878_s23  ;;  %1669 = vmatprep.mubr.msk.f32.mxu1 %vm1876_vm2, %v1877_v8 }
 0x103   : > { %v2093_v39 = vpop.f32.mrb[2].mxu0 }
 0x104   : > { %v1661_v40 = vpop.f32.mrb[3].mxu0  ;;  %1668 = vmatpush3.msra.mxu1 %v2093_v39 }
 0x105   : > { %1672 = vmatprep.subr.mxu1 %v1877_v8  ;;  %v1305_v40 = vld [vmem:[%s2244_s5 + $0x10] sm:$0xff] }
 0x165   : > { %v774_v43 = vpop.permute.xlu1 %773 }
 0x169   : > { %v772_v45 = vpop.permute.xlu1 %771 }
 0x1c9   : > { %v681_v28 = vpop.f32.mrb[2].mxu1 }
 0x1ca   : > { %v685_v30 = vmul.f32 0.35355338, %v681_v28  ;;  %v1666_v31 = vpop.f32.mrb[3].mxu1 }
 0x1cc   : > { %v686_v32 = vadd.f32 %v685_v30, %v2088_v29 }
 0x1ce   : > { %v687_v33 = vsel %vm608_vm3, %v686_v32, -inf }
 0x1cf   : > { %688 = vmax.xlane.f32.xlu0 %v687_v33 }
 0x25c   : > { %v689_v34 = vpop.xlane.xlu0 %688 }
 0x25d   : > { %v690_v35 = vsub.f32 %v686_v32, %v689_v34 }
 0x25f   : > { %v691_v36 = vmul.f32 1.442695, %v690_v35 }
 0x261   : > { %1793 = vpow2.f32 %v691_v36 }
 0x26b   : > { %v1794_v37 = vpop.eup %1793 }
 0x26c   : > { %v693_v38 = vsel %vm608_vm3, %v1794_v37, 0.0 }
 0x26d   : > { %694 = vadd.xlane.f32.xlu0 %v693_v38  ;;  %v1304_v38 = vld [vmem:[%s2244_s5 + $0x8] sm:$0xff] }
 0x2fa   : > { %v695_v41 = vpop.xlane.xlu0 %694 }
 0x2fb   : > { %1795 = vrcp.f32 %v695_v41  ;;  %v1306_v41 = vld [vmem:[%s2244_s5 + $0x18] sm:$0xff] }
 0x305   : > { %v1796_v42 = vpop.eup %1795 }
 0x306   : > { %v2097_v44 = vmul.f32 %v1796_v42, %v1794_v37  ;;  %v1303_v37 = vld [vmem:[%s2244_s5] sm:$0xff]  ;;  %v1742_v42 = vpack.c.bf16 %v1306_v41, %v1305_v40 }
 0x308   : > { %1670 = vmatmul.mubr.msk.f32.vlgmr.msra.gmra.mrb[4].mxu1 %vm608_vm3, %v2097_v44 }
 0x309   : > { %1673 = vmatpush3.xpose.msk.msra.mxu1 %vm608_vm3, %v774_v43  ;;  %1674 = vmatprep.mubr.msk.f32.mxu1 %vm1876_vm2, %v1877_v8 }
 0x30a   : > { %1677 = vmatprep.subr.mxu1 %v1877_v8 }
 0x30c   : > { %1675 = vmatmul.mubr.msk.f32.vlgmr.msra.gmra.mrb[6].mxu1 %vm608_vm3, %v772_v45 }
 0x30d   : > { %1679 = vmatprep.mubr.msk.f32.mxu1 %vm1876_vm2, %v1877_v8 }
 0x3db   : > { %v2108_v46 = vpop.f32.mrb[4].mxu1 }
 0x3dc   : > { %v1671_v47 = vpop.f32.mrb[5].mxu1 }
 0x3df   : > { %v845_v48 = vpop.f32.mrb[6].mxu1 }
 0x3e0   : > { %v849_v49 = vmul.f32 0.35355338, %v845_v48  ;;  %v1676_v50 = vpop.f32.mrb[7].mxu1 }
 0x3e2   : > { %v850_v51 = vadd.f32 %v849_v49, %v2088_v29 }
 0x3e4   : > { %v851_v52 = vsel %vm608_vm3, %v850_v51, -inf }
 0x3e5   : > { %852 = vmax.xlane.f32.xlu0 %v851_v52 }
 0x3fb   : > { %863 = vrot.lane.b32.xlu0 %v2093_v39, %s1878_s23  ;;  %s1880_s23 = smov 104  }
 0x3ff   : > { %941 = vrot.lane.b32.xlu0 %v2044_v17, %s1879_s9 }
 0x403   : > { %939 = vrot.lane.b32.xlu0 %v2050_v19, %s1879_s9 }
 0x472   : > { %v853_v53 = vpop.xlane.xlu0 %852 }
 0x473   : > { %v854_v54 = vsub.f32 %v850_v51, %v853_v53 }
 0x475   : > { %v855_v55 = vmul.f32 1.442695, %v854_v54 }
 0x476   : > { %v864_v56 = vpop.permute.xlu0 %863 }
 0x477   : > { %1797 = vpow2.f32 %v855_v55  ;;  %1678 = vmatpush3.msra.mxu1 %v864_v56 }
 0x478   : > { %1682 = vmatprep.subr.mxu1 %v1877_v8 }
 0x47a   : > { %v942_v61 = vpop.permute.xlu0 %941 }
 0x47e   : > { %v940_v63 = vpop.permute.xlu0 %939 }
 0x481   : > { %v1798_v57 = vpop.eup %1797 }
 0x482   : > { %v857_v58 = vsel %vm608_vm3, %v1798_v57, 0.0 }
 0x483   : > { %858 = vadd.xlane.f32.xlu1 %v857_v58 }
 0x494   : > { %1030 = vrot.lane.b32.xlu1 %v2093_v39, %s1879_s9 }
 0x498   : > { %1108 = vrot.lane.b32.xlu1 %v2044_v17, %s1880_s23 }
 0x510   : > { %v859_v59 = vpop.xlane.xlu1 %858 }
 0x511   : > { %1799 = vrcp.f32 %v859_v59 }
 0x514   : > { %v1031_v0 = vpop.permute.xlu1 %1030 }
 0x518   : > { %v1109_v17 = vpop.permute.xlu1 %1108 }
 0x51b   : > { %v1800_v60 = vpop.eup %1799 }
 0x51c   : > { %v2121_v62 = vmul.f32 %v1800_v60, %v1798_v57 }
 0x51e   : > { %1680 = vmatmul.mubr.msk.f32.vlgmr.msra.gmra.mrb[8].mxu1 %vm608_vm3, %v2121_v62 }
 0x51f   : > { %1683 = vmatpush3.xpose.msk.msra.mxu1 %vm608_vm3, %v942_v61  ;;  %1684 = vmatprep.mubr.msk.f32.mxu1 %vm1876_vm2, %v1877_v8 }
 0x520   : > { %1687 = vmatprep.subr.mxu1 %v1877_v8 }
 0x522   : > { %1685 = vmatmul.mubr.msk.f32.vlgmr.msra.gmra.mrb[10].mxu1 %vm608_vm3, %v940_v63 }
 0x523   : > { %1688 = vmatpush3.msra.mxu1 %v1031_v0  ;;  %1689 = vmatprep.mubr.msk.f32.mxu1 %vm1876_vm2, %v1877_v8 }
 0x524   : > { %1692 = vmatprep.subr.mxu1 %v1877_v8 }
 0x5f1   : > { %v935_v1 = vpop.f32.mrb[8].mxu1 }
 0x5f2   : > { %v1681_v2 = vpop.f32.mrb[9].mxu1 }
 0x5f5   : > { %v1013_v5 = vpop.f32.mrb[10].mxu1 }
 0x5f6   : > { %v1017_v6 = vmul.f32 0.35355338, %v1013_v5  ;;  %v1686_v7 = vpop.f32.mrb[11].mxu1 }
 0x5f8   : > { %v1018_v9 = vadd.f32 %v1017_v6, %v2088_v29 }
 0x5fa   : > { %v1019_v10 = vsel %vm608_vm3, %v1018_v9, -inf }
 0x5fb   : > { %1020 = vmax.xlane.f32.xlu0 %v1019_v10 }
 0x688   : > { %v1021_v11 = vpop.xlane.xlu0 %1020 }
 0x689   : > { %v1022_v12 = vsub.f32 %v1018_v9, %v1021_v11 }
 0x68b   : > { %v1023_v13 = vmul.f32 1.442695, %v1022_v12 }
 0x68d   : > { %1801 = vpow2.f32 %v1023_v13 }
 0x697   : > { %v1802_v14 = vpop.eup %1801 }
 0x698   : > { %v1025_v15 = vsel %vm608_vm3, %v1802_v14, 0.0 }
 0x699   : > { %1026 = vadd.xlane.f32.xlu1 %v1025_v15 }
 0x6aa   : > { %1106 = vrot.lane.b32.xlu1 %v2050_v19, %s1880_s23 }
 0x726   : > { %v1027_v18 = vpop.xlane.xlu1 %1026 }
 0x727   : > { %1803 = vrcp.f32 %v1027_v18 }
 0x72a   : > { %v1107_v22 = vpop.permute.xlu1 %1106 }
 0x731   : > { %v1804_v20 = vpop.eup %1803 }
 0x732   : > { %v1029_v21 = vmul.f32 %v1804_v20, %v1802_v14 }
 0x734   : > { %1690 = vmatmul.mubr.msk.f32.vlgmr.msra.gmra.mrb[12].mxu1 %vm608_vm3, %v1029_v21 }
 0x735   : > { %1693 = vmatpush3.xpose.msk.msra.mxu1 %vm608_vm3, %v1109_v17  ;;  %1694 = vmatprep.mubr.msk.f32.mxu1 %vm1876_vm2, %v1877_v8 }
 0x736   : > { %1697 = vmatprep.subr.mxu1 %v1877_v8 }
 0x738   : > { %1695 = vmatmul.mubr.msk.f32.vlgmr.msra.gmra.mrb[14].mxu1 %vm608_vm3, %v1107_v22 }
 0x739   : > { %1699 = vmatprep.mubr.msk.f32.mxu1 %vm1876_vm2, %v1877_v8 }
 0x807   : > { %v1102_v19 = vpop.f32.mrb[12].mxu1 }
 0x808   : > { %v1691_v23 = vpop.f32.mrb[13].mxu1 }
 0x80b   : > { %v1180_v24 = vpop.f32.mrb[14].mxu1 }
 0x80c   : > { %v1184_v25 = vmul.f32 0.35355338, %v1180_v24  ;;  %v1696_v26 = vpop.f32.mrb[15].mxu1 }
 0x80e   : > { %v1185_v27 = vadd.f32 %v1184_v25, %v2088_v29 }
 0x810   : > { %v1186_v28 = vsel %vm608_vm3, %v1185_v27, -inf }
 0x811   : > { %1187 = vmax.xlane.f32.xlu0 %v1186_v28 }
 0x827   : > { %1197 = vrot.lane.b32.xlu0 %v2093_v39, %s1880_s23  ;;  %v1738_v39 = vpack.c.bf16 %v1304_v38, %v1303_v37 }
 0x829   : > { %1740 = vmatpush3.bf16.xpose.msk.msra.mxu0 %vm1985_vm1, %v1738_v39 }
 0x82a   : > { %1741 = vmatprep.subr.bf16.mxu0 %v1875_v3 }
 0x82b   : > { %1289 = vrot.lane.b32.xlu0 %v935_v1, %s1881_s13 }
 0x82f   : > { %1293 = vrot.lane.b32.xlu0 %v1102_v19, %s1882_s14 }
 0x831   : > { %1744 = vmatpush3.bf16.xpose.msk.msra.mxu0 %vm1985_vm1, %v1742_v42 }
 0x89e   : > { %v1188_v8 = vpop.xlane.xlu0 %1187 }
 0x89f   : > { %v1189_v30 = vsub.f32 %v1185_v27, %v1188_v8 }
 0x8a1   : > { %v1190_v31 = vmul.f32 1.442695, %v1189_v30 }
 0x8a2   : > { %v1198_v32 = vpop.permute.xlu0 %1197 }
 0x8a3   : > { %1805 = vpow2.f32 %v1190_v31  ;;  %1698 = vmatpush3.msra.mxu1 %v1198_v32 }
 0x8a6   : > { %v1290_v47 = vpop.permute.xlu0 %1289 }
 0x8a7   : > { %v1300_v3 = vsel %vm608_vm3, %v2108_v46, %v1290_v47 }
 0x8aa   : > { %v1294_v48 = vpop.permute.xlu0 %1293 }
 0x8ab   : > { %v1301_v49 = vsel %vm1283_vm4, %v1300_v3, %v1294_v48 }
 0x8ad   : > { %v1806_v33 = vpop.eup %1805 }
 0x8ae   : > { %v1192_v29 = vsel %vm608_vm3, %v1806_v33, 0.0 }
 0x8af   : > { %1193 = vadd.xlane.f32.xlu1 %v1192_v29 }
 0x93c   : > { %v1194_v34 = vpop.xlane.xlu1 %1193 }
 0x93d   : > { %1807 = vrcp.f32 %v1194_v34 }
 0x947   : > { %v1808_v35 = vpop.eup %1807 }
 0x948   : > { %v1196_v36 = vmul.f32 %v1808_v35, %v1806_v33 }
 0x94a   : > { %1700 = vmatmul.mubr.msk.f32.vlgmr.msra.gmra.mrb[16].mxu1 %vm608_vm3, %v1196_v36 }
 0xa1d   : > { %v1269_v43 = vpop.f32.mrb[16].mxu1 }
 0xa1e   : > { %1297 = vrot.lane.b32.xlu0 %v1269_v43, %s1883_s8  ;;  %v1701_v45 = vpop.f32.mrb[17].mxu1 }
 0xa90   : > { %v1298_v50 = vpop.permute.xlu0 %1297 }
 0xa91   : > { %v1302_v51 = vsel %vm1285_vm5, %v1301_v49, %v1298_v50 }
 0xa92   : > { %1711 = vmatmul.mubr.msk.f32.vlgmr.msra.gmra.mrb[4].mxu0 %vm352_vm0, %v1302_v51 }
 0xb65   : > { %v1388_v4 = vpop.f32.mrb[4].mxu0 }
 0xb66   : > { %v1389_v52 = vadd.f32 %v1388_v4, %v2035_v16  ;;  %v1712_v53 = vpop.f32.mrb[5].mxu0 }
 0xb68   : > { %v1392_v54 = vsel %vm352_vm0, %v1389_v52, 0.0 }
 0xb69   : > { %1393 = vadd.xlane.f32.xlu1 %v1392_v54 }
 0xb7a   : > { %1273 = vrot.lane.b32.xlu1 %v2121_v62, %s1881_s13  ;;  %s335_s13 = scalar_lea.vmem %s2246_s7, %s2019_s16 }
 0xb7e   : > { %1276 = vrot.lane.b32.xlu1 %v1029_v21, %s1882_s14  ;;  %s307_s14 = sand.u32 1, %s1865_s25  }
 0xb7f   : > { %s1551_s15 = sshll.u32 %s307_s14, 3  ;;  %s1408_s22 = scalar_lea.sflag [#allocation3], %s307_s14 }
 0xb80   : > { %s309_s18 = scalar_lea.vmem [#allocation2], %s1551_s15 }
 0xb81   : > { %s1425_s19 = sshll.u32 %s309_s18, 4  ;;  %s2198_s19 = int_to_ptr.vmem [resolvable:$true] %s1425_s19 }
 0xb82   : > { %1279 = vrot.lane.b32.xlu1 %v1196_v36, %s1883_s8  ;;  %s1811_s29 = scalar_lea.vmem %s2198_s19, 128  ;;  %s1815_s8 = sshll.u32 %s1884_s28, 4  ;;  %s1816_s8 = int_to_ptr.vmem [resolvable:$false] %s1815_s8 }
 0xb83   : > { %p1812_p11 = scmp.ne.s32.totalorder %s2198_s19, %s1811_s29  ;;  %s1817_s9 = scalar_lea.vmem %s1816_s8, 256 }
 0xb84   : > { %p1818_p0 = scmp.lt.s32.totalorder %s2198_s19, %s1816_s8  ;;  %p1819_p1 = scmp.lt.s32.totalorder %s1817_s9, %s1811_s29 }
 0xb85   : > { %p1813_p12 = pnand %p1812_p11, %p1963_p5 }
 0xb86   : > { %p1820_p2 = por %p1819_p1, %p1818_p0 }
 0xb87   : > { %p1814_p13 = pneg %p1813_p12 }
 0xb89   : > { %p1821_p3 = pnand %p1820_p2, %p1814_p13 }
 0xbf6   : > { %v1394_v46 = vpop.xlane.xlu1 %1393 }
 0xbf7   : > { %v1396_v55 = vmul.f32 0.03125, %v1394_v46 }
 0xbf9   : > { %v1397_v56 = vsub.f32 %v1389_v52, %v1396_v55 }
 0xbfa   : > { %v1274_v57 = vpop.permute.xlu1 %1273 }
 0xbfb   : > { %v1398_v58 = vmul.f32 %v1397_v56, %v1397_v56  ;;  %v1282_v60 = vsel %vm608_vm3, %v2097_v44, %v1274_v57 }
 0xbfd   : > { %v1399_v16 = vsel %vm352_vm0, %v1398_v58, 0.0 }
 0xbfe   : > { %1400 = vadd.xlane.f32.xlu0 %v1399_v16  ;;  %v1277_v59 = vpop.permute.xlu1 %1276 }
 0xbff   : > { %v1284_v61 = vsel %vm1283_vm4, %v1282_v60, %v1277_v59 }
 0xc02   : > { %v1280_v62 = vpop.permute.xlu1 %1279 }
 0xc03   : > { %v1286_v63 = vsel %vm1285_vm5, %v1284_v61, %v1280_v62 }
 0xc04   : > { %1287 = vst.msk [vmem:[%s335_s13] sm:$0xff] %vm352_vm0, %v1286_v63 }
 0xc8b   : > { %v1401_v0 = vpop.xlane.xlu0 %1400 }
 0xc8c   : > { %v1402_v1 = vmul.f32 0.03125, %v1401_v0 }
 0xc8e   : > { %v1403_v2 = vadd.f32 1e-05, %v1402_v1 }
 0xc90   : > { %1809 = vrsqrt.f32 %v1403_v2 }
 0xc9a   : > { %v1810_v44 = vpop.eup %1809 }
 0xc9b   : > { %v1405_v5 = vmul.f32 %v1810_v44, %v1397_v56 }
 0xc9d   : > { %1406 = vst.msk [vmem:[%s309_s18] sm:$0xff] %vm352_vm0, %v1405_v5 }
 0xc9e   : > { %1824 = shalt.err (!%p1821_p3)
}
 0xc9f   : > { %s1825_s23 = scalar_lea.hbm %s2196_s21, 128  ;;  %s1829_s15 = scalar_lea.hbm %s2245_s6, 256 }
 0xca0   : > { %p1826_p4 = scmp.ne.s32.totalorder %s2196_s21, %s1825_s23  ;;  %p1830_p9 = scmp.lt.u32.totalorder %s2196_s21, %s2245_s6 }
 0xca1   : > { %p1831_p10 = scmp.lt.u32.totalorder %s1829_s15, %s1825_s23  ;;  %p1833_p12 = scmp.lt.u32.totalorder %s1825_s23, %s2196_s21 }
 0xca2   : > { %p1827_p7 = pnand %p1826_p4, %p1963_p5 }
 0xca3   : > { %p1832_p11 = por %p1831_p10, %p1830_p9 }
 0xca4   : > { %p1828_p8 = pneg %p1827_p7 }
 0xca5   : > { %p1834_p13 = por %p1833_p12, %p1832_p11 }
 0xca7   : > { %p1835_p0 = pnand %p1834_p13, %p1828_p8 }
 0xca9   : > { %1838 = shalt.err (!%p1835_p0)
}
 0xcaa   : > { %1745 = dma.vmem_to_hbm [thread:$0]  (%p1963_p5), %s2198_s19, 128, %s2196_s21, %s1408_s22  }
 0xcab PF: > { %p1751_p1 = scmp.ge.s32.totalorder %s1873_s27, 2  ;;  %s1440_s16 = sand.u32 1, %s1861_s24  }
 0xcac   : > { %s1441_s20 = scalar_lea.sflag [#allocation3], %s1440_s16 }
 0xcad   : > { %p1748_p2 = pnand %p1751_p1, %p1967_p6 }
 0xcaf   : > { %1856 = dma.done.wait (!%p1748_p2), %s1441_s20, 128  }
 0xcb0   : > { %1858 = vsyncadd (!%p1748_p2), %s1441_s20, 4294967168  ;;  %p18_p3 = scmp.ge.s32.totalorder %s1950_s30, 4   ;;  %s2251_s24 = smov %s1865_s25 }
 0xcb1   : > { %s2252_s25 = smov %s1869_s26  ;;  %s2253_s26 = smov %s1961_s10 }
 0xcb2   : > { %s2254_s27 = smov %s1950_s30  ;;  %20 = sbr.rel (!%p18_p3) target bundleno = 3 (0x3), region = 100 }
 0xcb9   :  { %1453 = vsyncpa [#allocation3], 1 }
 0xcba   :  { %1455 = vsyncpa [#allocation3 + $0x1], 1 }

</bundles_post_ra>
